<compile_context>
chip_gen: v7x
topology: tpu7x:2x2x1
jax: 0.10.0
libtpu: 0.0.40
codegen_flags: <defaults>
</compile_context>

<pallas_src>
import functools

import jax
import jax.numpy as jnp
from jax.experimental import pallas as pl
from jax.experimental.pallas import tpu as pltpu


# ----------------------------------------------------------------------------
# Shape helpers (mirror the PyTorch module's feature_size computation).
# ----------------------------------------------------------------------------
def _feature_size(hidden_size: int, po: int) -> int:
    if hidden_size == 1:
        assert 1 <= po <= 3
        return po
    elif hidden_size == 2:
        assert 1 <= po <= 3
        fs = 0
        if po >= 1:
            fs += 2
        if po >= 2:
            fs += 3
        if po >= 3:
            fs += 4
        return fs
    else:
        raise NotImplementedError


def _poly_feature_columns(hx, hidden_size: int, po: int):
    """List of (B, 1) polynomial feature columns, same order as the torch module."""
    feats = []
    if hidden_size == 1:
        h1 = hx[:, 0:1]
        if po >= 1:
            feats += [h1]
        if po >= 2:
            feats += [h1 * h1]
        if po >= 3:
            feats += [h1 * h1 * h1]
    elif hidden_size == 2:
        h1 = hx[:, 0:1]
        h2 = hx[:, 1:2]
        if po >= 1:
            feats += [h1, h2]
        if po >= 2:
            feats += [h1 * h1, h2 * h2, h1 * h2]
        if po >= 3:
            feats += [h1 * h1 * h1, h1 * h1 * h2, h1 * h2 * h2, h2 * h2 * h2]
    else:
        raise NotImplementedError
    return feats


def _pack_params(weight, bias):
    """(I, F*H + H) constant operand, FEATURE-MAJOR:
         column f*H + h  -> weight[h, f, :]
         column F*H + h  -> bias[h, :]
    Feature-major layout lets each recurrence step accumulate
       rec += sel_w[:, f*H:(f+1)*H] * feat_f
    with static lane slices only (no per-step concatenates / reduction matmul).
    Keep it f32: the one-hot selection must not round the parameters.
    (For repeated calls, hoist this packing out of the step/seq call.)"""
    H, F, I = weight.shape
    w_sel = jnp.transpose(weight, (2, 1, 0)).reshape(I, F * H)
    return jnp.concatenate([w_sel, bias.T], axis=1).astype(jnp.float32)


# ----------------------------------------------------------------------------
# Fused-sequence kernel.
# ----------------------------------------------------------------------------
def _pnr_seq_kernel(xs_ref, hx0_ref, packed_ref, hys_ref, *,
                    hidden_size, po, feature_size, seq_len, batch):
    H, F, T, B = hidden_size, feature_size, seq_len, batch
    N = F * H

    # ---- Hoisted, input-only work: ONE MXU pass selects the per-(step,row)
    # weights and biases for all T steps (selection depends only on x, never on
    # the recurrent state).  precision=HIGHEST keeps the one-hot selection
    # exact in f32.
    sel_all = jnp.dot(xs_ref[...], packed_ref[...],
                      preferred_element_type=jnp.float32,
                      precision=jax.lax.Precision.HIGHEST)      # (T*B, N + H)
    sel_w_all = sel_all[:, :N]                                   # (T*B, F*H)
    sel_b_all = sel_all[:, N:]                                   # (T*B, H)

    # ---- Serial recurrence: pure VPU per step (static slices + multiply-adds
    # on (B, H)-shaped values).  No per-step MXU issue, no concatenates.
    # T is small and static -> full unroll; use lax.fori_loop(unroll=4..8) with
    # pl.ds indexing for long sequences.
    hx = hx0_ref[...]
    for t in range(T):
        r0, r1 = t * B, (t + 1) * B
        sel_w = sel_w_all[r0:r1, :]                              # (B, F*H)
        sel_b = sel_b_all[r0:r1, :]                              # (B, H)
        feats = _poly_feature_columns(hx, H, po)                 # F x (B, 1)
        rec = sel_w[:, 0:H] * feats[0]
        for f in range(1, F):
            rec = rec + sel_w[:, f * H:(f + 1) * H] * feats[f]
        hx = hx + rec + sel_b                                    # (B, H)
        hys_ref[r0:r1, :] = hx


# ----------------------------------------------------------------------------
# Wrappers.
# ----------------------------------------------------------------------------
def pnr_cell_seq_forward(xs, state, weight, bias, *, polynomial_order):
    """T PNRCell steps fused in one pallas_call.

    xs: (T, B, I) one-hot rows per step (like the torch module, callers must
    pass rows summing to 1).  Returns (T, B, H): hy after each step.
    """
    hx0 = state[0]
    T, B, I = xs.shape
    H = hx0.shape[1]
    Hw, F, Iw = weight.shape
    assert Hw == H and Iw == I
    packed = _pack_params(weight, bias)                          # (I, F*H + H)
    xs2 = xs.reshape(T * B, I).astype(jnp.float32)               # flatten in wrapper

    kernel = functools.partial(_pnr_seq_kernel, hidden_size=H, po=polynomial_order,
                               feature_size=F, seq_len=T, batch=B)
    hys2 = pl.pallas_call(
        kernel,
        out_shape=jax.ShapeDtypeStruct((T * B, H), jnp.float32),
        in_specs=[pl.BlockSpec(memory_space=pltpu.MemorySpace.VMEM)] * 3,
        out_specs=pl.BlockSpec(memory_space=pltpu.MemorySpace.VMEM),
    )(xs2, hx0.astype(jnp.float32), packed)
    return hys2.reshape(T, B, H)


def pnr_cell_forward(x, state, weight, bias, *, polynomial_order):
    """Pallas equivalent of PNRCell.forward(input, state) -> hy[None, ...]."""
    # TODO(synk): the torch runtime assert (input.sum(-1) == 1).all() is assumed,
    # not re-checked in-kernel.
    return pnr_cell_seq_forward(x[None, ...], state, weight, bias,
                                polynomial_order=polynomial_order)   # (1, B, H)


# ----------------------------------------------------------------------------
# Pure-JAX references mirroring the PyTorch forward, for verification.
# ----------------------------------------------------------------------------
def pnr_cell_reference(x, state, weight, bias, *, polynomial_order):
    hx = state[0]
    H = weight.shape[0]
    trial_weight = (weight[None, :, :, :] * x[:, None, None, :]).sum(-1)   # (B, H, F)
    trial_bias = (bias[None, :, :] * x[:, None, :]).sum(-1)                # (B, H)
    feats = jnp.concatenate(_poly_feature_columns(hx, H, polynomial_order), axis=1)
    rec_temp = (trial_weight * feats[:, None, :]).sum(-1)                  # (B, H)
    return (hx + rec_temp + trial_bias)[None, ...]


def pnr_cell_seq_reference(xs, hx0, weight, bias, *, polynomial_order):
    hx = hx0
    outs = []
    for t in range(xs.shape[0]):
        hx = pnr_cell_reference(xs[t], (hx,), weight, bias,
                                polynomial_order=polynomial_order)[0]
        outs.append(hx)
    return jnp.stack(outs, axis=0)


# ----------------------------------------------------------------------------
if __name__ == "__main__":
    key = jax.random.PRNGKey(0)

    # ---- Case 1 & 2: hidden_size=2, po=3 (full feature set) ------------------
    # Bounded test data: with |w|<=0.005, |b|<=0.01, |h0|<=0.3 the 8-step cubic
    # recurrence provably stays within |h|<=0.6, so kernel and f32 reference
    # remain comparable (the old test's N(0,1) state blew up chaotically).
    input_size, hidden_size, po, batch, seq_len = 8, 2, 3, 8, 8
    feature_size = _feature_size(hidden_size, po)   # 9

    k1, k2, k3, k4, k5 = jax.random.split(key, 5)
    weight = jax.random.uniform(k1, (hidden_size, feature_size, input_size),
                                minval=-0.005, maxval=0.005, dtype=jnp.float32)
    bias = jax.random.uniform(k2, (hidden_size, input_size),
                              minval=-0.01, maxval=0.01, dtype=jnp.float32)
    idx = jax.random.randint(k3, (batch,), 0, input_size)
    x = jax.nn.one_hot(idx, input_size, dtype=jnp.float32)          # one-hot rows
    hx = jax.random.uniform(k4, (batch, hidden_size),
                            minval=-0.3, maxval=0.3, dtype=jnp.float32)

    # Single step.
    hy = jax.block_until_ready(
        pnr_cell_forward(x, (hx,), weight, bias, polynomial_order=po))
    hy_ref = pnr_cell_reference(x, (hx,), weight, bias, polynomial_order=po)
    assert hy.shape == (1, batch, hidden_size)
    if not jnp.allclose(hy, hy_ref, atol=1e-5, rtol=1e-5):
        raise AssertionError("single-step Pallas output does not match reference")

    # Fused T-step sequence.
    seq_idx = jax.random.randint(k5, (seq_len, batch), 0, input_size)
    xs = jax.nn.one_hot(seq_idx, input_size, dtype=jnp.float32)     # (T, B, I)
    hys = jax.block_until_ready(
        pnr_cell_seq_forward(xs, (hx,), weight, bias, polynomial_order=po))
    hys_ref = pnr_cell_seq_reference(xs, hx, weight, bias, polynomial_order=po)
    assert hys.shape == (seq_len, batch, hidden_size)
    if not jnp.allclose(hys, hys_ref, atol=1e-4, rtol=1e-4):
        err = float(jnp.max(jnp.abs(hys - hys_ref)))
        raise AssertionError(f"fused sequence mismatch (max abs err {err:.3e})")

    # ---- Case 3: hidden_size=1 branch (single step + short sequence) ---------
    h1_size, po1 = 1, 2
    f1 = _feature_size(h1_size, po1)
    kw, kb, kx, kh, ks = jax.random.split(jax.random.PRNGKey(1), 5)
    weight1 = jax.random.uniform(kw, (h1_size, f1, input_size),
                                 minval=-0.01, maxval=0.01, dtype=jnp.float32)
    bias1 = jax.random.uniform(kb, (h1_size, input_size),
                               minval=-0.01, maxval=0.01, dtype=jnp.float32)
    x1 = jax.nn.one_hot(jax.random.randint(kx, (batch,), 0, input_size),
                        input_size, dtype=jnp.float32)
    hx1 = jax.random.uniform(kh, (batch, h1_size),
                             minval=-0.3, maxval=0.3, dtype=jnp.float32)
    hy1 = jax.block_until_ready(
        pnr_cell_forward(x1, (hx1,), weight1, bias1, polynomial_order=po1))
    hy1_ref = pnr_cell_reference(x1, (hx1,), weight1, bias1, polynomial_order=po1)
    if not jnp.allclose(hy1, hy1_ref, atol=1e-5, rtol=1e-5):
        raise AssertionError("hidden_size=1 single-step output does not match reference")

    xs1 = jax.nn.one_hot(jax.random.randint(ks, (4, batch), 0, input_size),
                         input_size, dtype=jnp.float32)
    hys1 = jax.block_until_ready(
        pnr_cell_seq_forward(xs1, (hx1,), weight1, bias1, polynomial_order=po1))
    hys1_ref = pnr_cell_seq_reference(xs1, hx1, weight1, bias1, polynomial_order=po1)
    if not jnp.allclose(hys1, hys1_ref, atol=1e-4, rtol=1e-4):
        raise AssertionError("hidden_size=1 sequence output does not match reference")

    print("KERNEL_OK")
</pallas_src>

<mosaic_0001>
module attributes {stable_mosaic.version = 11 : i64} {
  func.func @_pnr_seq_kernel(%arg0: memref<8x8xf32, #tpu.memory_space<vmem>>, %arg1: memref<8x2xf32, #tpu.memory_space<vmem>>, %arg2: memref<8x20xf32, #tpu.memory_space<vmem>>, %arg3: memref<8x2xf32, #tpu.memory_space<vmem>>) attributes {dimension_semantics = [], scalar_prefetch = 0 : i64, scratch_operands = 0 : i64, tpu.core_type = #tpu.core_type<tc>} {
    %c0 = arith.constant 0 : index
    %c0_0 = arith.constant 0 : index
    %0 = vector.load %arg0[%c0, %c0_0] : memref<8x8xf32, #tpu.memory_space<vmem>>, vector<8x8xf32>
    %c0_1 = arith.constant 0 : index
    %c0_2 = arith.constant 0 : index
    %1 = vector.load %arg2[%c0_1, %c0_2] : memref<8x20xf32, #tpu.memory_space<vmem>>, vector<8x20xf32>
    %cst = arith.constant dense<0.000000e+00> : vector<8x20xf32>
    %2 = tpu.matmul %0, %1, %cst {dimension_numbers = #tpu.dot_dimension_numbers<[1], [0], [0], [1], [0, 0, 1, 1], [], []>, precision = #tpu.contract_precision<fp32>} : vector<8x8xf32>, vector<8x20xf32>, vector<8x20xf32> -> vector<8x20xf32>
    %3 = vector.extract_strided_slice %2 {offsets = [0, 0], sizes = [8, 18], strides = [1, 1]} : vector<8x20xf32> to vector<8x18xf32>
    %4 = vector.extract_strided_slice %2 {offsets = [0, 18], sizes = [8, 2], strides = [1, 1]} : vector<8x20xf32> to vector<8x2xf32>
    %c0_3 = arith.constant 0 : index
    %c0_4 = arith.constant 0 : index
    %5 = vector.load %arg1[%c0_3, %c0_4] : memref<8x2xf32, #tpu.memory_space<vmem>>, vector<8x2xf32>
    %6 = vector.extract_strided_slice %5 {offsets = [0, 0], sizes = [8, 1], strides = [1, 1]} : vector<8x2xf32> to vector<8x1xf32>
    %7 = vector.extract_strided_slice %5 {offsets = [0, 1], sizes = [8, 1], strides = [1, 1]} : vector<8x2xf32> to vector<8x1xf32>
    %8 = arith.mulf %6, %6 : vector<8x1xf32>
    %9 = arith.mulf %7, %7 : vector<8x1xf32>
    %10 = arith.mulf %6, %7 : vector<8x1xf32>
    %11 = arith.mulf %6, %6 : vector<8x1xf32>
    %12 = arith.mulf %11, %6 : vector<8x1xf32>
    %13 = arith.mulf %6, %6 : vector<8x1xf32>
    %14 = arith.mulf %13, %7 : vector<8x1xf32>
    %15 = arith.mulf %6, %7 : vector<8x1xf32>
    %16 = arith.mulf %15, %7 : vector<8x1xf32>
    %17 = arith.mulf %7, %7 : vector<8x1xf32>
    %18 = arith.mulf %17, %7 : vector<8x1xf32>
    %19 = vector.extract_strided_slice %3 {offsets = [0, 0], sizes = [8, 2], strides = [1, 1]} : vector<8x18xf32> to vector<8x2xf32>
    %20 = vector.broadcast %6 : vector<8x1xf32> to vector<8x2xf32>
    %21 = arith.mulf %19, %20 : vector<8x2xf32>
    %22 = vector.extract_strided_slice %3 {offsets = [0, 2], sizes = [8, 2], strides = [1, 1]} : vector<8x18xf32> to vector<8x2xf32>
    %23 = vector.broadcast %7 : vector<8x1xf32> to vector<8x2xf32>
    %24 = arith.mulf %22, %23 : vector<8x2xf32>
    %25 = arith.addf %21, %24 : vector<8x2xf32>
    %26 = vector.extract_strided_slice %3 {offsets = [0, 4], sizes = [8, 2], strides = [1, 1]} : vector<8x18xf32> to vector<8x2xf32>
    %27 = vector.broadcast %8 : vector<8x1xf32> to vector<8x2xf32>
    %28 = arith.mulf %26, %27 : vector<8x2xf32>
    %29 = arith.addf %25, %28 : vector<8x2xf32>
    %30 = vector.extract_strided_slice %3 {offsets = [0, 6], sizes = [8, 2], strides = [1, 1]} : vector<8x18xf32> to vector<8x2xf32>
    %31 = vector.broadcast %9 : vector<8x1xf32> to vector<8x2xf32>
    %32 = arith.mulf %30, %31 : vector<8x2xf32>
    %33 = arith.addf %29, %32 : vector<8x2xf32>
    %34 = vector.extract_strided_slice %3 {offsets = [0, 8], sizes = [8, 2], strides = [1, 1]} : vector<8x18xf32> to vector<8x2xf32>
    %35 = vector.broadcast %10 : vector<8x1xf32> to vector<8x2xf32>
    %36 = arith.mulf %34, %35 : vector<8x2xf32>
    %37 = arith.addf %33, %36 : vector<8x2xf32>
    %38 = vector.extract_strided_slice %3 {offsets = [0, 10], sizes = [8, 2], strides = [1, 1]} : vector<8x18xf32> to vector<8x2xf32>
    %39 = vector.broadcast %12 : vector<8x1xf32> to vector<8x2xf32>
    %40 = arith.mulf %38, %39 : vector<8x2xf32>
    %41 = arith.addf %37, %40 : vector<8x2xf32>
    %42 = vector.extract_strided_slice %3 {offsets = [0, 12], sizes = [8, 2], strides = [1, 1]} : vector<8x18xf32> to vector<8x2xf32>
    %43 = vector.broadcast %14 : vector<8x1xf32> to vector<8x2xf32>
    %44 = arith.mulf %42, %43 : vector<8x2xf32>
    %45 = arith.addf %41, %44 : vector<8x2xf32>
    %46 = vector.extract_strided_slice %3 {offsets = [0, 14], sizes = [8, 2], strides = [1, 1]} : vector<8x18xf32> to vector<8x2xf32>
    %47 = vector.broadcast %16 : vector<8x1xf32> to vector<8x2xf32>
    %48 = arith.mulf %46, %47 : vector<8x2xf32>
    %49 = arith.addf %45, %48 : vector<8x2xf32>
    %50 = vector.extract_strided_slice %3 {offsets = [0, 16], sizes = [8, 2], strides = [1, 1]} : vector<8x18xf32> to vector<8x2xf32>
    %51 = vector.broadcast %18 : vector<8x1xf32> to vector<8x2xf32>
    %52 = arith.mulf %50, %51 : vector<8x2xf32>
    %53 = arith.addf %49, %52 : vector<8x2xf32>
    %54 = arith.addf %5, %53 : vector<8x2xf32>
    %55 = arith.addf %54, %4 : vector<8x2xf32>
    %c0_5 = arith.constant 0 : index
    %c0_6 = arith.constant 0 : index
    %56 = vector.load %arg3[%c0_5, %c0_6] : memref<8x2xf32, #tpu.memory_space<vmem>>, vector<8x2xf32>
    tpu.vector_store %arg3[%c0_5, %c0_6], %55 {strides = array<i32>} : memref<8x2xf32, #tpu.memory_space<vmem>>, vector<8x2xf32>,
    return
  }
}

</mosaic_0001>

<bundles_post_ra>
// kernel: tpu_custom_call.1
= control target key start
LH: loop header
LB: loop body
LE: loop exit
PB: predicated region body
PF: predicated region fallthrough
CT: control target
= control target key end

     0   :  { %vm16_vm0 = vcmask 64512   ;;  %v649_v1 = vmov 0.0   ;;  %vm650_vm1 = vmmov 0   ;;  %s651_s18 = smov 127   ;;  %v652_v7 = vmov 1   ;;  %s657_s19 = smov 122   ;;  %s711_s1 = inlined_call_operand.vmem [shape: f32[8,2], index: 1, kind: input, shape index: {}]   ;;  %s712_s2 = inlined_call_operand.vmem [shape: f32[8,20], index: 2, kind: input, shape index: {}]   ;;  %s713_s0 = inlined_call_operand.vmem [shape: f32[8,8], index: 0, kind: input, shape index: {}]   ;;  %s714_s3 = inlined_call_operand.vmem [shape: f32[8,2], index: 3, kind: output, shape index: {}]  }
   0x1   :  { %v686_v0 = vld [vmem:[%s711_s1] sm:$0xff]  ;;  %605 = vmatprep.subr.mxu0 %v649_v1  ;;  %607 = vmatprep.mubr.msk.f32.mxu0 %vm650_vm1, %v649_v1  ;;  %v653_v12 = vmov 0   ;;  %s655_s1 = smov 126   ;;  %s658_s20 = smov 116   ;;  %vm572_vm2 = vcmask 15360  }
   0x2   :  { %v15_v2 = vld [vmem:[%s712_s2] sm:$0xff]  ;;  %469 = vrot.lane.b32.xlu0 %v686_v0, %s651_s18  ;;  %590 = vmatprep.subr.mxu1 %v649_v1  ;;  %v467_v8 = vmul.f32 %v686_v0, %v686_v0  ;;  %s656_s2 = smov 120   ;;  %s659_s21 = smov 118  }
   0x3   :  { %v14_v3 = vld [vmem:[%s713_s0] sm:$0xff]  ;;  %v21_v4 = vand.u32 4294901760, %v15_v2  ;;  %592 = vmatprep.mubr.msk.f32.mxu1 %vm650_vm1, %v649_v1  ;;  %643 = vset.pattern.permute.xlu0 %v652_v7  ;;  %s654_s0 = smov 124   ;;  %s660_s22 = smov 112  }
   0x4   :  { %v18_v5 = vsel %vm16_vm0, %v14_v3, 0  ;;  %644 = vset.pattern.permute.xlu1 %v653_v12  ;;  %v473_v15 = vmul.f32 %v467_v8, %v686_v0  ;;  %s661_s23 = smov 114   ;;  %s662_s24 = smov 110  }
   0x5   :  { %v86_v6 = vand.u32 4294901760, %v18_v5  ;;  %v98_v9 = vsub.f32 %v15_v2, %v21_v4  ;;  %606 = vmatpush3.msra.mxu0 %v21_v4  ;;  %591 = vmatpush3.msra.mxu1 %v21_v4 }
   0x6   :  { %595 = vmatprep.subr.mxu1 %v649_v1  ;;  %610 = vmatprep.subr.mxu0 %v649_v1 }
   0x7   :  { %v87_v10 = vsub.f32 %v18_v5, %v86_v6  ;;  %v99_v11 = vand.u32 4294901760, %v98_v9  ;;  %482 = vperm.xlu0 %643, %v686_v0   ;;  %493 = vperm.xlu1 %644, %v467_v8  }
   0x9   :  { %v88_v13 = vand.u32 4294901760, %v87_v10  ;;  %v100_v14 = vsub.f32 %v98_v9, %v99_v11 }
   0xb   :  { %608 = vmatmul.mubr.f32.vlgmr.msra.gmra.mrb[0].mxu0 %v88_v13  ;;  %v89_v16 = vsub.f32 %v87_v10, %v88_v13  ;;  %v101_v17 = vand.u32 4294901760, %v100_v14  ;;  %646 = vset.pattern.permute.xlu0 %v653_v12 }
   0xc   :  { %611 = vmatpush3.msra.mxu0 %v99_v11  ;;  %612 = vmatprep.mubr.msk.f32.mxu0 %vm650_vm1, %v649_v1 }
   0xd   :  { %v90_v18 = vand.u32 4294901760, %v89_v16  ;;  %615 = vmatprep.subr.mxu0 %v649_v1  ;;  %525 = vperm.xlu0 %646, %v473_v15  }
   0xe   :  { %645 = vset.pattern.permute.xlu1 %v652_v7 }
   0xf   :  { %593 = vmatmul.mubr.f32.vlgmr.msra.gmra.mrb[0].mxu1 %v90_v18  ;;  %503 = vperm.xlu1 %645, %v467_v8  }
  0x10   :  { %596 = vmatpush3.msra.mxu1 %v101_v17  ;;  %597 = vmatprep.mubr.msk.f32.mxu1 %vm650_vm1, %v649_v1 }
  0x11   :  { %600 = vmatprep.subr.mxu1 %v649_v1  ;;  %648 = vset.pattern.permute.xlu0 %v652_v7 }
  0x12   :  { %557 = vperm.xlu0 %648, %v473_v15  }
  0x13   :  { %613 = vmatmul.mubr.f32.vlgmr.msra.gmra.mrb[0].mxu0 %v86_v6  ;;  %647 = vset.pattern.permute.xlu1 %v653_v12 }
  0x14   :  { %616 = vmatpush3.msra.mxu0 %v21_v4  ;;  %617 = vmatprep.mubr.msk.f32.mxu0 %vm650_vm1, %v649_v1 }
  0x17   :  { %598 = vmatmul.mubr.f32.vlgmr.msra.gmra.mrb[0].mxu1 %v86_v6 }
  0x18   :  { %601 = vmatpush3.msra.mxu1 %v98_v9  ;;  %602 = vmatprep.mubr.msk.f32.mxu1 %vm650_vm1, %v649_v1 }
  0x1b   :  { %618 = vmatmul.mubr.f32.vlgmr.msra.gmra.mrb[0].mxu0 %v86_v6 }
  0x1f   :  { %603 = vmatmul.mubr.f32.vlgmr.msra.gmra.mrb[0].mxu1 %v87_v10 }
  0x74   :  { %v470_v19 = vpop.permute.xlu0 %469 }
  0x75   :  { %v472_v20 = vmul.f32 %v470_v19, %v686_v0  ;;  %v474_v21 = vmul.f32 %v470_v19, %v467_v8 }
  0x77   :  { %514 = vperm.xlu1 %647, %v472_v20   ;;  %v475_v22 = vmul.f32 %v472_v20, %v470_v19 }
  0x7b   :  { %536 = vperm.xlu1 %647, %v474_v21  }
  0x7f   :  { %547 = vperm.xlu1 %647, %v475_v22  }
  0x83   :  { %477 = vperm.xlu1 %647, %v686_v0  }
  0x86   :  { %v494_v23 = vpop.permute.xlu1 %493  ;;  %v483_v26 = vpop.permute.xlu0 %482 }
  0x8c   :  { %v526_v33 = vpop.permute.xlu0 %525 }
  0x8e   :  { %v504_v28 = vpop.permute.xlu1 %503 }
  0x91   :  { %v558_v40 = vpop.permute.xlu0 %557 }
  0xee   :  { %v462_v24 = vpop.f32.mrb[0].mxu0 }
  0xef   :  { %v619_v25 = vpop.f32.mrb[1].mxu0 }
  0xf2   :  { %v242_v27 = vpop.f32.mrb[0].mxu1 }
  0xf3   :  { %v620_v29 = vadd.f32 %v462_v24, %v242_v27  ;;  %v604_v30 = vpop.f32.mrb[1].mxu1 }
  0xf5   :  { %v496_v31 = vmul.f32 %v620_v29, %v494_v23  ;;  %v485_v32 = vmul.f32 %v620_v29, %v483_v26  ;;  %v506_v35 = vmul.f32 %v620_v29, %v504_v28  ;;  %v528_v39 = vmul.f32 %v620_v29, %v526_v33 }
  0xf6   :  { %v515_v34 = vpop.permute.xlu1 %514  ;;  %v560_v42 = vmul.f32 %v620_v29, %v558_v40 }
  0xf7   :  { %498 = vrot.lane.b32.xlu0 %v496_v31, %s654_s0  ;;  %487 = vrot.lane.b32.xlu1 %v485_v32, %s655_s1  ;;  %v517_v36 = vmul.f32 %v620_v29, %v515_v34 }
  0xfa   :  { %v537_v37 = vpop.permute.xlu1 %536 }
  0xfb   :  { %519 = vrot.lane.b32.xlu0 %v517_v36, %s656_s2  ;;  %508 = vrot.lane.b32.xlu1 %v506_v35, %s657_s19  ;;  %v539_v38 = vmul.f32 %v620_v29, %v537_v37 }
  0xfe   :  { %v548_v41 = vpop.permute.xlu1 %547 }
  0xff   :  { %541 = vrot.lane.b32.xlu0 %v539_v38, %s658_s20  ;;  %530 = vrot.lane.b32.xlu1 %v528_v39, %s659_s21  ;;  %v550_v43 = vmul.f32 %v620_v29, %v548_v41 }
 0x102   :  { %v478_v44 = vpop.permute.xlu1 %477 }
 0x103   :  { %562 = vrot.lane.b32.xlu0 %v560_v42, %s660_s22  ;;  %552 = vrot.lane.b32.xlu1 %v550_v43, %s661_s23  ;;  %v480_v45 = vmul.f32 %v620_v29, %v478_v44 }
 0x107   :  { %568 = vrot.lane.b32.xlu1 %v620_v29, %s662_s24 }
 0x169   :  { %v499_v46 = vpop.permute.xlu0 %498  ;;  %v488_v47 = vpop.permute.xlu1 %487 }
 0x16a   :  { %v490_v48 = vadd.f32 %v488_v47, %v480_v45 }
 0x16c   :  { %v501_v49 = vadd.f32 %v499_v46, %v490_v48 }
 0x16d   :  { %v520_v50 = vpop.permute.xlu0 %519  ;;  %v509_v51 = vpop.permute.xlu1 %508 }
 0x16e   :  { %v511_v52 = vadd.f32 %v509_v51, %v501_v49 }
 0x170   :  { %v522_v53 = vadd.f32 %v520_v50, %v511_v52 }
 0x171   :  { %v542_v54 = vpop.permute.xlu0 %541  ;;  %v531_v55 = vpop.permute.xlu1 %530 }
 0x172   :  { %v533_v56 = vadd.f32 %v531_v55, %v522_v53 }
 0x174   :  { %v544_v57 = vadd.f32 %v542_v54, %v533_v56 }
 0x175   :  { %v553_v58 = vpop.permute.xlu1 %552  ;;  %v563_v60 = vpop.permute.xlu0 %562 }
 0x176   :  { %v555_v59 = vadd.f32 %v553_v58, %v544_v57 }
 0x178   :  { %v565_v61 = vadd.f32 %v563_v60, %v555_v59 }
 0x179   :  { %v569_v63 = vpop.permute.xlu1 %568 }
 0x17a   :  { %v566_v62 = vadd.f32 %v565_v61, %v686_v0 }
 0x17c   :  { %v571_v1 = vadd.f32 %v569_v63, %v566_v62 }
 0x17e   :  { %573 = vst.msk [vmem:[%s714_s3] sm:$0xff] %vm572_vm2, %v571_v1 }

</bundles_post_ra>
